<compile_context>
chip_gen: v7x
topology: tpu7x:2x2x1
jax: 0.10.0
libtpu: 0.0.40
codegen_flags: <defaults>
</compile_context>

<pallas_src>
import functools

import jax
import jax.numpy as jnp
from jax.experimental import pallas as pl
from jax.experimental.pallas import tpu as pltpu

LANE = 128
SUBLANE = 8
MXU_M = 256  # v6e/v7x MXU M dim; also a multiple of v5e's 128 -> safe everywhere


def _round_up(x, m):
    return (x + m - 1) // m * m


# ----------------------------------------------------------------------------
# Hardware-aware defaults
# ----------------------------------------------------------------------------
def _vmem_budget_and_cap():
    """Pick (budget_bytes, vmem_limit_cap_bytes) from the chip's VMEM size."""
    vmem_cap = 64 << 20  # conservative default: v7x (64 MiB per TensorCore)
    try:
        info = pltpu.get_tpu_info()
        vmem_cap = int(getattr(info, "vmem_capacity_bytes", vmem_cap))
    except Exception:
        pass
    if vmem_cap >= (100 << 20):           # v5e / v6e: 128 MiB
        return 96 << 20, 100 << 20
    return 40 << 20, 48 << 20             # v7x: 64 MiB


# ----------------------------------------------------------------------------
# One-time capability probe: single-buffered (pipeline_mode=pl.Buffered(1))
# constant operands.  Keeps the resident weights at 1x instead of 2x VMEM.
# ----------------------------------------------------------------------------
_SINGLE_BUFFER_OK = None


def _supports_single_buffered_constants():
    global _SINGLE_BUFFER_OK
    if _SINGLE_BUFFER_OK is not None:
        return _SINGLE_BUFFER_OK
    try:
        def _probe_kernel(x_ref, w_ref, o_ref):
            o_ref[...] = x_ref[...] + w_ref[...]

        f = pl.pallas_call(
            _probe_kernel,
            out_shape=jax.ShapeDtypeStruct((16, 128), jnp.float32),
            grid_spec=pltpu.PrefetchScalarGridSpec(
                num_scalar_prefetch=0,
                grid=(2,),
                in_specs=[
                    pl.BlockSpec((8, 128), lambda i: (i, 0)),
                    pl.BlockSpec((8, 128), lambda i: (0, 0),
                                 pipeline_mode=pl.Buffered(1)),
                ],
                out_specs=pl.BlockSpec((8, 128), lambda i: (i, 0)),
            ),
        )
        jax.block_until_ready(
            f(jnp.zeros((16, 128), jnp.float32), jnp.ones((8, 128), jnp.float32)))
        _SINGLE_BUFFER_OK = True
    except Exception:
        # Old jax/libtpu builds without pipeline_mode / Buffered(1) support.
        _SINGLE_BUFFER_OK = False
    return _SINGLE_BUFFER_OK


# ----------------------------------------------------------------------------
# Kernel
# ----------------------------------------------------------------------------
def _fc_kernel(x_ref, w1s_ref, b1s_ref, w2_ref, b2_ref, w3_ref, b3_ref, o_ref,
               *, d_pad):
    # Cast x to the weight compute dtype (bf16) in-kernel (no-op for bf16 x).
    x = x_ref[...].astype(w1s_ref.dtype)

    # Fused first layer + skip branch: one MXU pass over x against [W1 | Ws],
    # then a static, lane-aligned split (d_pad is a multiple of 128).
    h1s = jnp.dot(x, w1s_ref[...], preferred_element_type=jnp.float32)
    h1s = h1s + b1s_ref[...]                 # f32 biases
    h = jnp.maximum(h1s[:, :d_pad], 0.0)     # fc branch, layer 1 (+ReLU)
    skip = h1s[:, d_pad:]                    # skip branch (no ReLU)

    # fc branch, layers 2 and 3 (bf16 operands, f32 accumulation).
    h = jnp.dot(h.astype(w2_ref.dtype), w2_ref[...],
                preferred_element_type=jnp.float32) + b2_ref[...]
    h = jnp.maximum(h, 0.0)
    h = jnp.dot(h.astype(w3_ref.dtype), w3_ref[...],
                preferred_element_type=jnp.float32) + b3_ref[...]
    h = jnp.maximum(h, 0.0)

    out = h + skip
    d_out = o_ref.shape[-1]
    if d_out != d_pad:                       # drop padded columns in-kernel
        out = out[:, :d_out]
    o_ref[...] = out.astype(o_ref.dtype)


# ----------------------------------------------------------------------------
# Wrapper
# ----------------------------------------------------------------------------
@functools.partial(
    jax.jit, static_argnames=("d_out", "block_n", "single_buffer_weights"))
def _fc_forward(x, packed, *, d_out, block_n, single_buffer_weights):
    n, d_in = x.shape
    w1s, b1s = packed["w1s"], packed["b1s"]
    w2, b2 = packed["w2"], packed["b2"]
    w3, b3 = packed["w3"], packed["b3"]
    d_pad = w2.shape[0]                       # padded (lane-dense) feature dim

    budget, limit_cap = _vmem_budget_and_cap()
    nbuf_w = 1 if single_buffer_weights else 2
    w_bytes = (w1s.size * w1s.dtype.itemsize
               + w2.size * w2.dtype.itemsize
               + w3.size * w3.dtype.itemsize)
    b_bytes = (b1s.size + b2.size + b3.size) * 4
    fudge = 4 << 20                           # Mosaic internal scratch headroom

    def vmem_estimate(tb_):
        x_bytes = 2 * tb_ * d_in * x.dtype.itemsize     # double-buffered input
        o_bytes = 2 * tb_ * d_out * 4                    # double-buffered f32 out
        interm = tb_ * (2 * d_pad * 4     # h1s (f32, width 2*d_pad)
                        + 3 * d_pad * 4   # h / skip / out f32 temporaries
                        + d_pad * 2       # bf16 re-cast of h
                        + d_in * 2)       # bf16 cast of x
        return x_bytes + o_bytes + interm + nbuf_w * (w_bytes + b_bytes) + fudge

    # ---- capacity guard: resident weights must fit ---------------------------
    if vmem_estimate(SUBLANE) > budget:
        # TODO(synk): add an output-feature grid axis tiling W2/W3 columns for
        # very wide layers instead of keeping all weights resident.
        raise ValueError(
            f"FC weights ({(nbuf_w * (w_bytes + b_bytes)) >> 20} MiB resident) "
            f"do not fit the VMEM budget ({budget >> 20} MiB); d_pad={d_pad} is "
            f"too large for the resident-weight kernel on this TPU generation.")

    # ---- row-tile selection ---------------------------------------------------
    if n <= block_n:
        if n >= 2 * MXU_M:
            # Big enough: split into >=2 MXU-M-aligned tiles (keeps both v7x
            # TensorCores busy on the "parallel" axis).
            tb = _round_up(pl.cdiv(n, 2), MXU_M)
        elif n >= 4 * SUBLANE:
            tb = _round_up(pl.cdiv(n, 2), SUBLANE)
        else:
            tb = n                             # single full-extent tile
    else:
        tb = _round_up(min(block_n, n), MXU_M)

    # Shrink the row tile if the estimate exceeds the budget (weights fit by
    # the guard above, so this always terminates at a feasible tile).
    while vmem_estimate(tb) > budget and tb > SUBLANE:
        new_tb = max(SUBLANE, _round_up(tb // 2, SUBLANE))
        if new_tb == tb:
            break
        tb = new_tb

    # Rebalance to an even tile count (2-TC v7x megacore balance; harmless on
    # 1-TC parts).  Smaller tiles always fit VMEM since the larger one did.
    grid_n = pl.cdiv(n, tb)
    if grid_n > 1 and grid_n % 2 == 1:
        for g in (grid_n + 1, grid_n + 3):
            cand = _round_up(pl.cdiv(n, g), SUBLANE)
            if cand >= SUBLANE and pl.cdiv(n, cand) % 2 == 0:
                tb = cand
                break
        grid_n = pl.cdiv(n, tb)

    vmem_limit = int(min(max(vmem_estimate(tb) + (8 << 20), 32 << 20), limit_cap))
    grid = (grid_n,)

    # ---- BlockSpecs -----------------------------------------------------------
    def rep(shape):
        # Constant (grid-invariant) operands: single-buffer when supported so
        # the resident weights don't eat 2x VMEM out of the row-tile budget.
        if single_buffer_weights:
            return pl.BlockSpec(shape, lambda i: (0, 0),
                                pipeline_mode=pl.Buffered(1))
        return pl.BlockSpec(shape, lambda i: (0, 0))

    kernel = functools.partial(_fc_kernel, d_pad=d_pad)

    flops = 2 * n * (d_in * 2 * d_pad + 2 * d_pad * d_pad)
    bytes_accessed = (x.size * x.dtype.itemsize + w_bytes + b_bytes
                      + n * d_out * 4)
    cost = pl.CostEstimate(flops=flops, transcendentals=0,
                           bytes_accessed=bytes_accessed)

    out = pl.pallas_call(
        kernel,
        out_shape=jax.ShapeDtypeStruct((n, d_out), jnp.float32),
        grid_spec=pltpu.PrefetchScalarGridSpec(
            num_scalar_prefetch=0,
            grid=grid,
            in_specs=[
                pl.BlockSpec((tb, d_in), lambda i: (i, 0)),   # x row tile
                rep((d_in, 2 * d_pad)),                       # [W1 | Ws] fused
                rep((1, 2 * d_pad)),                          # [b1 | bs] fused
                rep((d_pad, d_pad)),                          # W2
                rep((1, d_pad)),                              # b2
                rep((d_pad, d_pad)),                          # W3
                rep((1, d_pad)),                              # b3
            ],
            out_specs=pl.BlockSpec((tb, d_out), lambda i: (i, 0)),
        ),
        compiler_params=pltpu.CompilerParams(
            dimension_semantics=("parallel",),
            vmem_limit_bytes=vmem_limit),
        cost_estimate=cost,
    )(x, w1s, b1s, w2, b2, w3, b3)
    return out


def fc_forward(x, packed, d_out, *, block_n=512):
    """x: (N, input_dim). `packed` / `d_out` come from prepare_params()."""
    return _fc_forward(
        x, packed, d_out=d_out, block_n=block_n,
        single_buffer_weights=_supports_single_buffered_constants())


# ----------------------------------------------------------------------------
# Parameter handling
# ----------------------------------------------------------------------------
def init_fc_params(key, input_dim, output_dim, dtype=jnp.float32):
    """PyTorch-style nn.Linear init: U(-1/sqrt(fan_in), 1/sqrt(fan_in)).

    Weights stored transposed as (in, out) for the kernel's x @ W layout.
    """
    def linear(k, fan_in, fan_out):
        kw, kb = jax.random.split(k)
        bound = 1.0 / jnp.sqrt(jnp.array(fan_in, dtype))
        w = jax.random.uniform(kw, (fan_in, fan_out), dtype, -bound, bound)
        b = jax.random.uniform(kb, (1, fan_out), dtype, -bound, bound)
        return w, b

    k1, k2, k3, k4 = jax.random.split(key, 4)
    w1, b1 = linear(k1, input_dim, output_dim)
    w2, b2 = linear(k2, output_dim, output_dim)
    w3, b3 = linear(k3, output_dim, output_dim)
    ws, bs = linear(k4, input_dim, output_dim)
    return dict(w1=w1, b1=b1, w2=w2, b2=b2, w3=w3, b3=b3, ws=ws, bs=bs)


def prepare_params(params, compute_dtype=jnp.bfloat16):
    """Host-side packing (done once): pad feature dims to a multiple of 128
    (lane-dense), cast weights to bf16, and fuse W1/Ws (and b1/bs) so the two
    x-consuming matmuls become a single MXU op in the kernel."""
    d_in, d_out = params["w1"].shape
    d_pad = _round_up(d_out, LANE)

    def pad_w(w, rows, cols):
        return jnp.pad(w, ((0, rows - w.shape[0]), (0, cols - w.shape[1])))

    def pad_b(b, cols):
        return jnp.pad(b, ((0, 0), (0, cols - b.shape[1])))

    w1p = pad_w(params["w1"], d_in, d_pad).astype(compute_dtype)
    wsp = pad_w(params["ws"], d_in, d_pad).astype(compute_dtype)
    w2p = pad_w(params["w2"], d_pad, d_pad).astype(compute_dtype)
    w3p = pad_w(params["w3"], d_pad, d_pad).astype(compute_dtype)
    b1p = pad_b(params["b1"], d_pad).astype(jnp.float32)
    bsp = pad_b(params["bs"], d_pad).astype(jnp.float32)
    b2p = pad_b(params["b2"], d_pad).astype(jnp.float32)
    b3p = pad_b(params["b3"], d_pad).astype(jnp.float32)

    packed = dict(
        w1s=jnp.concatenate([w1p, wsp], axis=1),   # (d_in, 2*d_pad)
        b1s=jnp.concatenate([b1p, bsp], axis=1),   # (1,    2*d_pad)
        w2=w2p, b2=b2p, w3=w3p, b3=b3p)
    return packed, d_out


# ----------------------------------------------------------------------------
# References
# ----------------------------------------------------------------------------
def fc_reference(x, p):
    """Pure-JAX f32 reference (matches the torch module's math)."""
    h = jnp.maximum(x @ p["w1"] + p["b1"], 0.0)
    h = jnp.maximum(h @ p["w2"] + p["b2"], 0.0)
    h = jnp.maximum(h @ p["w3"] + p["b3"], 0.0)
    return h + (x @ p["ws"] + p["bs"])


def fc_reference_bf16(x, packed, d_out):
    """Precision-matched reference (bf16 operands, f32 accumulation)."""
    d_pad = packed["w2"].shape[0]
    xb = x.astype(packed["w1s"].dtype)
    h1s = jnp.dot(xb, packed["w1s"], preferred_element_type=jnp.float32) + packed["b1s"]
    h = jnp.maximum(h1s[:, :d_pad], 0.0)
    skip = h1s[:, d_pad:]
    h = jnp.dot(h.astype(packed["w2"].dtype), packed["w2"],
                preferred_element_type=jnp.float32) + packed["b2"]
    h = jnp.maximum(h, 0.0)
    h = jnp.dot(h.astype(packed["w3"].dtype), packed["w3"],
                preferred_element_type=jnp.float32) + packed["b3"]
    h = jnp.maximum(h, 0.0)
    return (h + skip)[:, :d_out]


# ----------------------------------------------------------------------------
if __name__ == "__main__":
    key = jax.random.PRNGKey(0)
    kx, kp = jax.random.split(key)

    batch = 8
    input_dim = 32
    output_dim = 32

    x = jax.random.normal(kx, (batch, input_dim), jnp.float32)
    params = init_fc_params(kp, input_dim, output_dim)
    packed, d_out = prepare_params(params)

    out = fc_forward(x, packed, d_out)
    out = jax.block_until_ready(out)
    assert out.shape == (batch, output_dim), out.shape

    # Tight check against a precision-matched (bf16-operand) reference.
    ref_bf16 = fc_reference_bf16(x, packed, d_out)
    err_bf16 = float(jnp.max(jnp.abs(out - ref_bf16)))
    assert err_bf16 < 1e-2, err_bf16

    # Looser sanity check against the full-f32 module semantics.
    ref_f32 = fc_reference(x, params)
    err_f32 = float(jnp.max(jnp.abs(out - ref_f32)))
    assert err_f32 < 1e-1, err_f32

    print("KERNEL_OK")
</pallas_src>

<mosaic_0001>
module attributes {stable_mosaic.version = 11 : i64} {
  func.func @_probe_kernel(%arg0: i32, %arg1: memref<8x128xf32, #tpu.memory_space<vmem>>, %arg2: memref<8x128xf32, #tpu.memory_space<vmem>>, %arg3: memref<8x128xf32, #tpu.memory_space<vmem>>) attributes {dimension_semantics = [#tpu.dimension_semantics<arbitrary>], iteration_bounds = array<i64: 2>, scalar_prefetch = 0 : i64, scratch_operands = 0 : i64, tpu.core_type = #tpu.core_type<tc>, window_params = [{transform_indices = @transform_0, window_bounds = array<i64: 8, 128>}, {pipeline_mode = #tpu.pipeline_mode<synchronous>, transform_indices = @transform_1, window_bounds = array<i64: 8, 128>}, {transform_indices = @transform_2, window_bounds = array<i64: 8, 128>}]} {
    %c0 = arith.constant 0 : index
    %c0_0 = arith.constant 0 : index
    %0 = vector.load %arg1[%c0, %c0_0] : memref<8x128xf32, #tpu.memory_space<vmem>>, vector<8x128xf32>
    %c0_1 = arith.constant 0 : index
    %c0_2 = arith.constant 0 : index
    %1 = vector.load %arg2[%c0_1, %c0_2] : memref<8x128xf32, #tpu.memory_space<vmem>>, vector<8x128xf32>
    %2 = arith.addf %0, %1 : vector<8x128xf32>
    %c0_3 = arith.constant 0 : index
    %c0_4 = arith.constant 0 : index
    %3 = vector.load %arg3[%c0_3, %c0_4] : memref<8x128xf32, #tpu.memory_space<vmem>>, vector<8x128xf32>
    tpu.vector_store %arg3[%c0_3, %c0_4], %2 {strides = array<i32>} : memref<8x128xf32, #tpu.memory_space<vmem>>, vector<8x128xf32>,
    return
  }
  func.func @transform_0(%arg0: i32) -> (i32, i32) {
    %c0_i32 = arith.constant 0 : i32
    %c0_i32_0 = arith.constant 0 : i32
    return %arg0, %c0_i32 : i32, i32
  }
  func.func @transform_1(%arg0: i32) -> (i32, i32) {
    %c0_i32 = arith.constant 0 : i32
    %c0_i32_0 = arith.constant 0 : i32
    %c0_i32_1 = arith.constant 0 : i32
    return %c0_i32, %c0_i32_0 : i32, i32
  }
  func.func @transform_2(%arg0: i32) -> (i32, i32) {
    %c0_i32 = arith.constant 0 : i32
    %c0_i32_0 = arith.constant 0 : i32
    return %arg0, %c0_i32 : i32, i32
  }
}

module attributes {stable_mosaic.version = 11 : i64} {
  func.func @_fc_kernel(%arg0: i32, %arg1: memref<8x32xf32, #tpu.memory_space<vmem>>, %arg2: memref<32x256xbf16, #tpu.memory_space<vmem>>, %arg3: memref<1x256xf32, #tpu.memory_space<vmem>>, %arg4: memref<128x128xbf16, #tpu.memory_space<vmem>>, %arg5: memref<1x128xf32, #tpu.memory_space<vmem>>, %arg6: memref<128x128xbf16, #tpu.memory_space<vmem>>, %arg7: memref<1x128xf32, #tpu.memory_space<vmem>>, %arg8: memref<8x32xf32, #tpu.memory_space<vmem>>) attributes {dimension_semantics = [#tpu.dimension_semantics<parallel>], iteration_bounds = array<i64: 1>, scalar_prefetch = 0 : i64, scratch_operands = 0 : i64, tpu.core_type = #tpu.core_type<tc>, window_params = [{transform_indices = @transform_0, window_bounds = array<i64: 8, 32>}, {pipeline_mode = #tpu.pipeline_mode<synchronous>, transform_indices = @transform_1, window_bounds = array<i64: 32, 256>}, {pipeline_mode = #tpu.pipeline_mode<synchronous>, transform_indices = @transform_2, window_bounds = array<i64: 1, 256>}, {pipeline_mode = #tpu.pipeline_mode<synchronous>, transform_indices = @transform_3, window_bounds = array<i64: 128, 128>}, {pipeline_mode = #tpu.pipeline_mode<synchronous>, transform_indices = @transform_4, window_bounds = array<i64: 1, 128>}, {pipeline_mode = #tpu.pipeline_mode<synchronous>, transform_indices = @transform_5, window_bounds = array<i64: 128, 128>}, {pipeline_mode = #tpu.pipeline_mode<synchronous>, transform_indices = @transform_6, window_bounds = array<i64: 1, 128>}, {transform_indices = @transform_7, window_bounds = array<i64: 8, 32>}]} {
    %c0 = arith.constant 0 : index
    %c0_0 = arith.constant 0 : index
    %0 = vector.load %arg1[%c0, %c0_0] : memref<8x32xf32, #tpu.memory_space<vmem>>, vector<8x32xf32>
    %1 = arith.truncf %0 : vector<8x32xf32> to vector<8x32xbf16>
    %c0_1 = arith.constant 0 : index
    %c0_2 = arith.constant 0 : index
    %2 = vector.load %arg2[%c0_1, %c0_2] : memref<32x256xbf16, #tpu.memory_space<vmem>>, vector<32x256xbf16>
    %cst = arith.constant dense<0.000000e+00> : vector<8x256xf32>
    %3 = tpu.matmul %1, %2, %cst {dimension_numbers = #tpu.dot_dimension_numbers<[1], [0], [0], [1], [0, 0, 1, 1], [], []>} : vector<8x32xbf16>, vector<32x256xbf16>, vector<8x256xf32> -> vector<8x256xf32>
    %c0_3 = arith.constant 0 : index
    %c0_4 = arith.constant 0 : index
    %4 = vector.load %arg3[%c0_3, %c0_4] : memref<1x256xf32, #tpu.memory_space<vmem>>, vector<1x256xf32>
    %5 = vector.broadcast %4 : vector<1x256xf32> to vector<8x256xf32>
    %6 = arith.addf %3, %5 : vector<8x256xf32>
    %7 = vector.extract_strided_slice %6 {offsets = [0, 0], sizes = [8, 128], strides = [1, 1]} : vector<8x256xf32> to vector<8x128xf32>
    %cst_5 = arith.constant 0.000000e+00 : f32
    %8 = vector.broadcast %cst_5 : f32 to vector<8x128xf32>
    %9 = arith.maximumf %7, %8 : vector<8x128xf32>
    %10 = vector.extract_strided_slice %6 {offsets = [0, 128], sizes = [8, 128], strides = [1, 1]} : vector<8x256xf32> to vector<8x128xf32>
    %11 = arith.truncf %9 : vector<8x128xf32> to vector<8x128xbf16>
    %c0_6 = arith.constant 0 : index
    %c0_7 = arith.constant 0 : index
    %12 = vector.load %arg4[%c0_6, %c0_7] : memref<128x128xbf16, #tpu.memory_space<vmem>>, vector<128x128xbf16>
    %cst_8 = arith.constant dense<0.000000e+00> : vector<8x128xf32>
    %13 = tpu.matmul %11, %12, %cst_8 {dimension_numbers = #tpu.dot_dimension_numbers<[1], [0], [0], [1], [0, 0, 1, 1], [], []>} : vector<8x128xbf16>, vector<128x128xbf16>, vector<8x128xf32> -> vector<8x128xf32>
    %c0_9 = arith.constant 0 : index
    %c0_10 = arith.constant 0 : index
    %14 = vector.load %arg5[%c0_9, %c0_10] : memref<1x128xf32, #tpu.memory_space<vmem>>, vector<1x128xf32>
    %15 = vector.broadcast %14 : vector<1x128xf32> to vector<8x128xf32>
    %16 = arith.addf %13, %15 : vector<8x128xf32>
    %cst_11 = arith.constant 0.000000e+00 : f32
    %17 = vector.broadcast %cst_11 : f32 to vector<8x128xf32>
    %18 = arith.maximumf %16, %17 : vector<8x128xf32>
    %19 = arith.truncf %18 : vector<8x128xf32> to vector<8x128xbf16>
    %c0_12 = arith.constant 0 : index
    %c0_13 = arith.constant 0 : index
    %20 = vector.load %arg6[%c0_12, %c0_13] : memref<128x128xbf16, #tpu.memory_space<vmem>>, vector<128x128xbf16>
    %cst_14 = arith.constant dense<0.000000e+00> : vector<8x128xf32>
    %21 = tpu.matmul %19, %20, %cst_14 {dimension_numbers = #tpu.dot_dimension_numbers<[1], [0], [0], [1], [0, 0, 1, 1], [], []>} : vector<8x128xbf16>, vector<128x128xbf16>, vector<8x128xf32> -> vector<8x128xf32>
    %c0_15 = arith.constant 0 : index
    %c0_16 = arith.constant 0 : index
    %22 = vector.load %arg7[%c0_15, %c0_16] : memref<1x128xf32, #tpu.memory_space<vmem>>, vector<1x128xf32>
    %23 = vector.broadcast %22 : vector<1x128xf32> to vector<8x128xf32>
    %24 = arith.addf %21, %23 : vector<8x128xf32>
    %cst_17 = arith.constant 0.000000e+00 : f32
    %25 = vector.broadcast %cst_17 : f32 to vector<8x128xf32>
    %26 = arith.maximumf %24, %25 : vector<8x128xf32>
    %27 = arith.addf %26, %10 : vector<8x128xf32>
    %28 = vector.extract_strided_slice %27 {offsets = [0, 0], sizes = [8, 32], strides = [1, 1]} : vector<8x128xf32> to vector<8x32xf32>
    %c0_18 = arith.constant 0 : index
    %c0_19 = arith.constant 0 : index
    %29 = vector.load %arg8[%c0_18, %c0_19] : memref<8x32xf32, #tpu.memory_space<vmem>>, vector<8x32xf32>
    tpu.vector_store %arg8[%c0_18, %c0_19], %28 {strides = array<i32>} : memref<8x32xf32, #tpu.memory_space<vmem>>, vector<8x32xf32>,
    return
  }
  func.func @transform_0(%arg0: i32) -> (i32, i32) {
    %c0_i32 = arith.constant 0 : i32
    %c0_i32_0 = arith.constant 0 : i32
    return %arg0, %c0_i32 : i32, i32
  }
  func.func @transform_1(%arg0: i32) -> (i32, i32) {
    %c0_i32 = arith.constant 0 : i32
    %c0_i32_0 = arith.constant 0 : i32
    %c0_i32_1 = arith.constant 0 : i32
    return %c0_i32, %c0_i32_0 : i32, i32
  }
  func.func @transform_2(%arg0: i32) -> (i32, i32) {
    %c0_i32 = arith.constant 0 : i32
    %c0_i32_0 = arith.constant 0 : i32
    %c0_i32_1 = arith.constant 0 : i32
    return %c0_i32, %c0_i32_0 : i32, i32
  }
  func.func @transform_3(%arg0: i32) -> (i32, i32) {
    %c0_i32 = arith.constant 0 : i32
    %c0_i32_0 = arith.constant 0 : i32
    %c0_i32_1 = arith.constant 0 : i32
    return %c0_i32, %c0_i32_0 : i32, i32
  }
  func.func @transform_4(%arg0: i32) -> (i32, i32) {
    %c0_i32 = arith.constant 0 : i32
    %c0_i32_0 = arith.constant 0 : i32
    %c0_i32_1 = arith.constant 0 : i32
    return %c0_i32, %c0_i32_0 : i32, i32
  }
  func.func @transform_5(%arg0: i32) -> (i32, i32) {
    %c0_i32 = arith.constant 0 : i32
    %c0_i32_0 = arith.constant 0 : i32
    %c0_i32_1 = arith.constant 0 : i32
    return %c0_i32, %c0_i32_0 : i32, i32
  }
  func.func @transform_6(%arg0: i32) -> (i32, i32) {
    %c0_i32 = arith.constant 0 : i32
    %c0_i32_0 = arith.constant 0 : i32
    %c0_i32_1 = arith.constant 0 : i32
    return %c0_i32, %c0_i32_0 : i32, i32
  }
  func.func @transform_7(%arg0: i32) -> (i32, i32) {
    %c0_i32 = arith.constant 0 : i32
    %c0_i32_0 = arith.constant 0 : i32
    return %arg0, %c0_i32 : i32, i32
  }
}

</mosaic_0001>

<bundles_post_ra>
// kernel: tpu_custom_call.1
= control target key start
LH: loop header
LB: loop body
LE: loop exit
PB: predicated region body
PF: predicated region fallthrough
CT: control target
= control target key end

     0   :  { %7 = vsyncpa [#allocation3], 0  ;;  %s690_s0 = inlined_call_operand.hbm [shape: f32[16,128], index: 0, kind: input, shape index: {}]   ;;  %s691_s1 = inlined_call_operand.hbm [shape: f32[8,128], index: 1, kind: input, shape index: {}]   ;;  %s692_s2 = inlined_call_operand.hbm [shape: f32[16,128], index: 2, kind: output, shape index: {}]  }
   0x1   :  { %9 = vsyncpa [#allocation3 + $0x1], 0 }
   0x2   :  { %10 = vsyncpa [#allocation6], 0 }
   0x3   :  { %11 = vsyncpa [#allocation4], 0 }
   0x4   :  { %13 = vsyncpa [#allocation4 + $0x1], 0  ;;  %s489_s9 = smov 0   ;;  %s491_s10 = smov 0  }
   0x5   :  { %s493_s11 = smov 0   ;;  %s495_s12 = smov 0  }
   0x6 LB: > { %s510_s13 = sadd.s32 4294967295, %s469_s12   ;;  %s270_s14 = sadd.s32 4294967294, %s469_s12   ;;  %s469_s12 = sphi %s495_s12, %s716_s12   ;;  %s465_s11 = sphi %s493_s11, %s715_s11   ;;  %s461_s10 = sphi %s491_s10, %s714_s10   ;;  %s457_s9 = sphi %s489_s9, %s713_s9  }
   0x7   : > { %p39_p0 = scmp.ne.s32.totalorder %s461_s10, %s457_s9  ;;  %p693_p1 = scmp.eq.s32.totalorder %s510_s13, 0 }
   0x8   : > { %p90_p3 = scmp.eq.s32.totalorder %s270_s14, 1  ;;  %p271_p5 = scmp.ge.s32.totalorder %s469_s12, 1 }
   0x9   : > { %p519_p4 = por %p693_p1, %p39_p0  ;;  %p97_p7 = scmp.lt.s32.totalorder %s469_s12, 3 }
   0xa   : > { %p524_p6 = por %p90_p3, %p39_p0  ;;  %s471_s18 = smov [#allocation5]  }
   0xb   : > { %s696_s15 = scalar_select %p519_p4, 1, 0 }
   0xc   : > { %s697_s16 = scalar_select %p524_p6, 1, 0 }
   0xd   : > { %p529_p8 = pnand %p271_p5, %p97_p7  ;;  %s110_s19 = sshll.u32 %s471_s18, 4  ;;  %s111_s19 = int_to_ptr.vmem [resolvable:$true] %s110_s19 }
   0xe   : > { %s537_s20 = sadd.s32 1, %s469_s12   ;;  %s26_s24 = sadd.s32 1, %s465_s11 }
   0xf   : > { %s698_s17 = scalar_select %p529_p8, 1, 0 }
  0x10   : > { %p292_p10 = pneg %p529_p8  ;;  %s23_s22 = ssub.s32 %s469_s12, %s537_s20 }
  0x11   : > { %p547_p12 = scmp.eq.s32.totalorder %s23_s22, 0  ;;  %s341_s27 = scalar_lea.hbm %s691_s1, 128 }
  0x12   : > { %p541_p11 = pnand %p292_p10, %p693_p1  ;;  %p342_p0 = scmp.ne.s32.totalorder %s691_s1, %s341_s27 }
  0x13   : > { %s700_s23 = scalar_select %p547_p12, 1, 0 }
  0x14   : > { %p343_p3 = pneg %p541_p11  ;;  %p348_p10 = scmp.lt.u32.totalorder %s341_s27, %s691_s1 }
  0x16   : > { %p344_p5 = pnand %p343_p3, %p342_p0 }
  0x18   : > { %p345_p7 = pneg %p344_p5 }
  0x1a   : > { %p350_p9 = pnand %p348_p10, %p345_p7 }
  0x1c   : > { %353 = shalt.err (!%p350_p9)
}
  0x1d   : > { %s354_s4 = scalar_lea.vmem %s111_s19, 128  ;;  %p362_p6 = scmp.lt.s32.totalorder %s111_s19, %s111_s19 }
  0x1e   : > { %p355_p1 = scmp.ne.s32.totalorder %s111_s19, %s354_s4  ;;  %p363_p4 = scmp.lt.s32.totalorder %s354_s4, %s354_s4 }
  0x20   : > { %p357_p2 = pnand %p355_p1, %p343_p3  ;;  %p364_p8 = por %p363_p4, %p362_p6 }
  0x22   : > { %p358_p13 = pneg %p357_p2 }
  0x24   : > { %p365_p12 = pnand %p364_p8, %p358_p13 }
  0x26   : > { %368 = shalt.err (!%p365_p12)
}
  0x27   : > { %295 = dma.hbm_to_vmem [thread:$0]  (!%p541_p11), %s691_s1, 128, %s111_s19, [#allocation6]  }
  0x28   : > { %p701_p1 = scmp.ne.s32.totalorder %s700_s23, 0  ;;  %p34_p2 = scmp.eq.s32.totalorder %s469_s12, 0 }
  0x29   : > { %p702_p4 = scmp.ne.s32.totalorder %s465_s11, %s461_s10  ;;  %p703_p6 = scmp.eq.s32.totalorder %s510_s13, 1 }
  0x2a   : > { %s573_s7 = scalar_select %p701_p1, %s465_s11, %s26_s24  }
  0x2b   : > { %p581_p8 = por %p703_p6, %p702_p4  ;;  %p305_p9 = scmp.lt.s32.totalorder %s469_s12, 2 }
  0x2c   : > { %s121_s14 = sand.u32 1, %s465_s11   ;;  %p705_p12 = pmov %p702_p4 }
  0x2d   : > { %s274_s18 = sshll.u32 %s121_s14, 3  ;;  %s275_s21 = sshll.u32 %s469_s12, 7 }
  0x2e   : > { %p35_p13 = por %p34_p2, %p705_p12  ;;  %s594_s19 = scalar_lea.hbm %s690_s0, %s275_s21 }
  0x2f   : > { %s125_s23 = scalar_lea.vmem [#allocation2], %s274_s18  ;;  %s122_s27 = scalar_lea.sflag [#allocation3], %s121_s14 }
  0x30   : > { %s132_s24 = sshll.u32 %s125_s23, 4  ;;  %p596_p11 = pnand %p305_p9, %p35_p13  ;;  %s600_s24 = int_to_ptr.vmem [resolvable:$true] %s132_s24 }
  0x31   : > { %s369_s28 = scalar_lea.hbm %s594_s19, 128  ;;  %s374_s3 = scalar_lea.hbm %s690_s0, 256 }
  0x32   : > { %p370_p0 = scmp.ne.s32.totalorder %s594_s19, %s369_s28  ;;  %p371_p3 = pneg %p596_p11 }
  0x33   : > { %p375_p10 = scmp.lt.u32.totalorder %s594_s19, %s690_s0  ;;  %p376_p1 = scmp.lt.u32.totalorder %s374_s3, %s369_s28 }
  0x34   : > { %p372_p5 = pnand %p371_p3, %p370_p0  ;;  %p378_p4 = scmp.lt.u32.totalorder %s369_s28, %s594_s19 }
  0x35   : > { %p377_p2 = por %p376_p1, %p375_p10 }
  0x36   : > { %p373_p7 = pneg %p372_p5 }
  0x37   : > { %p379_p6 = por %p378_p4, %p377_p2 }
  0x39   : > { %p380_p9 = pnand %p379_p6, %p373_p7 }
  0x3b   : > { %383 = shalt.err (!%p380_p9)
}
  0x3c   : > { %s384_s6 = scalar_lea.vmem %s600_s24, 128  ;;  %s472_s14 = smov [#allocation2]  }
  0x3d   : > { %p385_p12 = scmp.ne.s32.totalorder %s600_s24, %s384_s6  ;;  %s389_s18 = sshll.u32 %s472_s14, 4  ;;  %s390_s18 = int_to_ptr.vmem [resolvable:$false] %s389_s18 }
  0x3e   : > { %s391_s21 = scalar_lea.vmem %s390_s18, 256  ;;  %p392_p5 = scmp.lt.s32.totalorder %s600_s24, %s390_s18 }
  0x3f   : > { %p387_p13 = pnand %p385_p12, %p371_p3  ;;  %p393_p10 = scmp.lt.s32.totalorder %s391_s21, %s384_s6 }
  0x41   : > { %p388_p0 = pneg %p387_p13  ;;  %p394_p1 = por %p393_p10, %p392_p5 }
  0x43   : > { %p395_p2 = pnand %p394_p1, %p388_p0 }
  0x45   : > { %398 = shalt.err (!%p395_p2)
}
  0x46   : > { %299 = dma.hbm_to_vmem [thread:$0]  (!%p596_p11), %s594_s19, 128, %s600_s24, %s122_s27  }
  0x47   : > { %p707_p7 = scmp.ne.s32.totalorder %s698_s17, 0 }
  0x48   : > { %s630_s22 = sand.u32 (!%p707_p7), 1, %s461_s10   ;;  %p708_p3 = scmp.ne.s32.totalorder (!%p707_p7), %s696_s15, 0 }
  0x49   : > { %141 = sbr.rel (%p707_p7) target bundleno = 109 (0x6d), region = 28  ;;  %s277_s25 = sshll.u32 (!%p707_p7), %s630_s22, 3 }
  0x4a   : > { %s144_s23 = scalar_lea.sflag (!%p707_p7), [#allocation3], %s630_s22  ;;  %s147_s28 = scalar_lea.vmem (!%p707_p7), [#allocation2], %s277_s25 }
  0x50   : > { %444 = dma.done.wait (%p708_p3), %s144_s23, 128  }
  0x51   : > { %446 = vsyncadd (%p708_p3), %s144_s23, 4294967168  ;;  %p709_p4 = scmp.eq.s32.totalorder %s510_s13, 0 }
  0x53   : > { %448 = dma.done.wait (%p709_p4), [#allocation6], 128   ;;  %p710_p11 = pmov %p709_p4 }
  0x54   : > { %s171_s17 = scalar_lea.vmem [#allocation7], %s277_s25  ;;  %s281_s24 = sshll.u32 %s510_s13, 7  ;;  %v172_v0 = vld [vmem:[%s147_s28] sm:$0xff]  ;;  %v173_v1 = vld [vmem:[#allocation5] sm:$0xff] }
  0x55   : > { %450 = vsyncadd (%p710_p11), [#allocation6], 4294967168  ;;  %s190_s19 = sshll.u32 %s171_s17, 4  ;;  %v174_v2 = vadd.f32 %v173_v1, %v172_v0  ;;  %s648_s27 = scalar_lea.hbm %s692_s2, %s281_s24  ;;  %s643_s19 = int_to_ptr.vmem [resolvable:$true] %s190_s19 }
  0x56   : > { %s177_s29 = scalar_lea.sflag [#allocation4], %s630_s22  ;;  %s399_s30 = scalar_lea.vmem %s643_s19, 128 }
  0x57   : > { %175 = vst [vmem:[%s171_s17] sm:$0xff] %v174_v2  ;;  %p400_p6 = scmp.ne.s32.totalorder %s643_s19, %s399_s30  ;;  %s473_s13 = smov [#allocation7]  }
  0x58   : > { %s403_s3 = sshll.u32 %s473_s13, 4  ;;  %s404_s3 = int_to_ptr.vmem [resolvable:$false] %s403_s3 }
  0x59   : > { %p401_p9 = pnand %p400_p6, %p581_p8  ;;  %s405_s4 = scalar_lea.vmem %s404_s3, 256 }
  0x5a   : > { %p406_p13 = scmp.lt.s32.totalorder %s643_s19, %s404_s3  ;;  %p407_p0 = scmp.lt.s32.totalorder %s405_s4, %s399_s30 }
  0x5b   : > { %p402_p12 = pneg %p401_p9 }
  0x5c   : > { %p408_p5 = por %p407_p0, %p406_p13 }
  0x5e   : > { %p409_p10 = pnand %p408_p5, %p402_p12 }
  0x60   : > { %412 = shalt.err (!%p409_p10)
}
  0x61   : > { %s413_s5 = scalar_lea.hbm %s648_s27, 128  ;;  %s417_s18 = scalar_lea.hbm %s692_s2, 256 }
  0x62   : > { %p414_p1 = scmp.ne.s32.totalorder %s648_s27, %s413_s5  ;;  %p418_p3 = scmp.lt.u32.totalorder %s648_s27, %s692_s2 }
  0x63   : > { %p419_p4 = scmp.lt.u32.totalorder %s417_s18, %s413_s5  ;;  %p421_p6 = scmp.lt.u32.totalorder %s413_s5, %s648_s27 }
  0x64   : > { %p415_p2 = pnand %p414_p1, %p581_p8 }
  0x65   : > { %p420_p11 = por %p419_p4, %p418_p3 }
  0x66   : > { %p416_p7 = pneg %p415_p2 }
  0x67   : > { %p422_p9 = por %p421_p6, %p420_p11 }
  0x69   : > { %p423_p12 = pnand %p422_p9, %p416_p7 }
  0x6b   : > { %426 = shalt.err (!%p423_p12)
}
  0x6c   : > { %290 = dma.vmem_to_hbm [thread:$0]  (%p581_p8), %s643_s19, 128, %s648_s27, %s177_s29  }
  0x6d PF: > { %s202_s25 = sand.u32 1, %s457_s9   ;;  %p711_p13 = scmp.ne.s32.totalorder %s697_s16, 0 }
  0x6e   : > { %p712_p0 = scmp.ge.s32.totalorder %s469_s12, 2  ;;  %s203_s23 = scalar_lea.sflag [#allocation4], %s202_s25 }
  0x70   : > { %p301_p5 = pnand %p712_p0, %p711_p13 }
  0x72   : > { %452 = dma.done.wait (!%p301_p5), %s203_s23, 128  }
  0x73   : > { %454 = vsyncadd (!%p301_p5), %s203_s23, 4294967168  ;;  %p16_p10 = scmp.ge.s32.totalorder %s537_s20, 4   ;;  %s713_s9 = smov %s461_s10 }
  0x74   : > { %s714_s10 = smov %s465_s11  ;;  %s715_s11 = smov %s573_s7 }
  0x75   : > { %s716_s12 = smov %s537_s20  ;;  %18 = sbr.rel (!%p16_p10) target bundleno = 6 (0x6), region = 77 }
  0x7c   :  { %208 = vsyncpa [#allocation3], 1 }
  0x7d   :  { %210 = vsyncpa [#allocation3 + $0x1], 1 }
  0x7e   :  { %211 = vsyncpa [#allocation6], 1 }
  0x7f   :  { %212 = vsyncpa [#allocation4], 1 }
  0x80   :  { %214 = vsyncpa [#allocation4 + $0x1], 1 }

// kernel: _fc_forward.1
= control target key start
LH: loop header
LB: loop body
LE: loop exit
PB: predicated region body
PF: predicated region fallthrough
CT: control target
= control target key end

     0   :  { %12 = vsyncpa [#allocation3], 0  ;;  %s784_s0 = inlined_call_operand.hbm [shape: f32[8,32], index: 0, kind: input, shape index: {}]   ;;  %s785_s1 = inlined_call_operand.hbm [shape: bf16[32,256], index: 1, kind: input, shape index: {}]   ;;  %s786_s2 = inlined_call_operand.vmem [shape: f32[1,256], index: 2, kind: input, shape index: {}]   ;;  %s787_s3 = inlined_call_operand.hbm [shape: bf16[128,128], index: 3, kind: input, shape index: {}]   ;;  %s788_s4 = inlined_call_operand.vmem [shape: f32[1,128], index: 4, kind: input, shape index: {}]   ;;  %s789_s5 = inlined_call_operand.hbm [shape: bf16[128,128], index: 5, kind: input, shape index: {}]   ;;  %s790_s6 = inlined_call_operand.vmem [shape: f32[1,128], index: 6, kind: input, shape index: {}]   ;;  %s791_s7 = inlined_call_operand.hbm [shape: f32[8,32], index: 7, kind: output, shape index: {}]  }
   0x1   :  { %13 = vsyncpa [#allocation6], 0 }
   0x2   :  { %14 = vsyncpa [#allocation9], 0 }
   0x3   :  { %15 = vsyncpa [#allocation4], 0  ;;  %s643_s24 = smov [#allocation5]   ;;  %s525_s28 = scalar_lea.hbm %s785_s1, 512 }
   0x4   :  { %s31_s25 = sshll.u32 %s643_s24, 4  ;;  %p526_p0 = scmp.ne.s32.totalorder %s785_s1, %s525_s28  ;;  %s32_s25 = int_to_ptr.vmem [resolvable:$true] %s31_s25 }
   0x5   :  { %p529_p1 = scmp.lt.u32.totalorder %s525_s28, %s785_s1 }
   0x7   :  { %p531_p2 = pnand %p529_p1, %p526_p0 }
   0x9   :  { %534 = shalt.err (!%p531_p2)
}
   0xa   :  { %s535_s10 = scalar_lea.vmem %s32_s25, 512  ;;  %p540_p4 = scmp.lt.s32.totalorder %s32_s25, %s32_s25 }
   0xb   :  { %p536_p3 = scmp.ne.s32.totalorder %s32_s25, %s535_s10  ;;  %p541_p5 = scmp.lt.s32.totalorder %s535_s10, %s535_s10 }
   0xd   :  { %p542_p6 = por %p541_p5, %p540_p4 }
   0xf   :  { %p543_p7 = pnand %p542_p6, %p536_p3 }
  0x11   :  { %546 = shalt.err (!%p543_p7)
}
  0x12   :  { %s644_s11 = smov 128   ;;  %s645_s12 = smov 8  }
  0x13   :  { %37 = dma.hbm_to_vmem [thread:$0]  %s785_s1, 512, %s32_s25, [#allocation6], %s644_s11, %s644_s11, %s645_s12  }
  0x14   :  { %s646_s15 = smov [#allocation2]   ;;  %s647_s17 = smov [#allocation7]  }
  0x15   :  { %s22_s16 = sshll.u32 %s646_s15, 4  ;;  %s45_s18 = sshll.u32 %s647_s17, 4  ;;  %s23_s16 = int_to_ptr.vmem [resolvable:$true] %s22_s16  ;;  %s46_s18 = int_to_ptr.vmem [resolvable:$true] %s45_s18 }
  0x16   :  { %s547_s21 = scalar_lea.hbm %s784_s0, 128 }
  0x17   :  { %p548_p8 = scmp.ne.s32.totalorder %s784_s0, %s547_s21  ;;  %p551_p9 = scmp.lt.u32.totalorder %s547_s21, %s784_s0 }
  0x19   :  { %p553_p10 = pnand %p551_p9, %p548_p8 }
  0x1b   :  { %556 = shalt.err (!%p553_p10)
}
  0x1c   :  { %s557_s1 = scalar_lea.vmem %s23_s16, 128  ;;  %p562_p12 = scmp.lt.s32.totalorder %s23_s16, %s23_s16 }
  0x1d   :  { %p558_p11 = scmp.ne.s32.totalorder %s23_s16, %s557_s1  ;;  %p563_p13 = scmp.lt.s32.totalorder %s557_s1, %s557_s1 }
  0x1f   :  { %p564_p0 = por %p563_p13, %p562_p12 }
  0x21   :  { %p565_p1 = pnand %p564_p0, %p558_p11 }
  0x23   :  { %568 = shalt.err (!%p565_p1)
}
  0x24   :  { %25 = dma.hbm_to_vmem [thread:$0]  %s784_s0, 128, %s23_s16, [#allocation3]  }
  0x25   :  { %s569_s30 = scalar_lea.hbm %s787_s3, 1024 }
  0x26   :  { %p570_p2 = scmp.ne.s32.totalorder %s787_s3, %s569_s30  ;;  %p573_p3 = scmp.lt.u32.totalorder %s569_s30, %s787_s3 }
  0x28   :  { %p575_p4 = pnand %p573_p3, %p570_p2 }
  0x2a   :  { %578 = shalt.err (!%p575_p4)
}
  0x2b   :  { %s579_s12 = scalar_lea.vmem %s46_s18, 1024  ;;  %p584_p6 = scmp.lt.s32.totalorder %s46_s18, %s46_s18 }
  0x2c   :  { %p580_p5 = scmp.ne.s32.totalorder %s46_s18, %s579_s12  ;;  %p585_p7 = scmp.lt.s32.totalorder %s579_s12, %s579_s12 }
  0x2e   :  { %p586_p8 = por %p585_p7, %p584_p6 }
  0x30   :  { %p587_p9 = pnand %p586_p8, %p580_p5 }
  0x32   :  { %590 = shalt.err (!%p587_p9)
}
  0x33   :  { %s648_s0 = smov 64   ;;  %s649_s13 = smov 4  }
  0x34   :  { %51 = dma.hbm_to_vmem [thread:$0]  %s787_s3, 1024, %s46_s18, [#allocation6], %s648_s0, %s648_s0, %s649_s13  }
  0x35   :  { %s650_s16 = smov [#allocation8]   ;;  %s591_s21 = scalar_lea.hbm %s789_s5, 1024 }
  0x36   :  { %s59_s17 = sshll.u32 %s650_s16, 4  ;;  %p592_p10 = scmp.ne.s32.totalorder %s789_s5, %s591_s21  ;;  %s60_s17 = int_to_ptr.vmem [resolvable:$true] %s59_s17 }
  0x37   :  { %p595_p11 = scmp.lt.u32.totalorder %s591_s21, %s789_s5 }
  0x39   :  { %p597_p12 = pnand %p595_p11, %p592_p10 }
  0x3b   :  { %600 = shalt.err (!%p597_p12)
}
  0x3c   :  { %s601_s1 = scalar_lea.vmem %s60_s17, 1024  ;;  %p606_p0 = scmp.lt.s32.totalorder %s60_s17, %s60_s17 }
  0x3d   :  { %p602_p13 = scmp.ne.s32.totalorder %s60_s17, %s601_s1  ;;  %p607_p1 = scmp.lt.s32.totalorder %s601_s1, %s601_s1 }
  0x3f   :  { %p608_p2 = por %p607_p1, %p606_p0 }
  0x41   :  { %p609_p3 = pnand %p608_p2, %p602_p13 }
  0x43   :  { %612 = shalt.err (!%p609_p3)
}
  0x44   :  { %65 = dma.hbm_to_vmem [thread:$0]  %s789_s5, 1024, %s60_s17, [#allocation9], %s648_s0, %s648_s0, %s649_s13  }
  0x45   :  { %635 = dma.done.wait [#allocation3], 128  }
  0x46   :  { %636 = vsyncadd [#allocation3], 4294967168 }
  0x47   :  { %637 = dma.done.wait [#allocation6], 1536  }
  0x48   :  { %638 = vsyncadd [#allocation6], 4294965760 }
  0x49   :  { %639 = dma.done.wait [#allocation9], 1024  }
  0x4a   :  { %640 = vsyncadd [#allocation9], 4294966272  ;;  %v651_v0 = vmov 0   ;;  %v652_v1 = vmov 0.0   ;;  %v503_v2 = vld [vmem:[#allocation5 + $0x4] ss:$8 sps:$4 sm:$0xff]   ;;  %v89_v22 = vlaneseq }
  0x4b   :  { %155 = vmatprep.mubr.bf16.mxu0 %v651_v0  ;;  %451 = vmatprep.subr.bf16.mxu1 %v652_v1  ;;  %v505_v3 = vld [vmem:[#allocation5] ss:$8 sps:$4 sm:$0xff]   ;;  %v506_v4 = vld [vmem:[#allocation5 + $0x14] ss:$8 sps:$4 sm:$0xff]   ;;  %v508_v5 = vld [vmem:[#allocation5 + $0x10] ss:$8 sps:$4 sm:$0xff]  }
  0x4c   :  { %123 = vmatprep.subr.bf16.mxu0 %v503_v2  ;;  %v81_v6 = vld [vmem:[#allocation2] sm:$0xff]  ;;  %v509_v7 = vld [vmem:[#allocation7] sm:$0xff]   ;;  %v510_v8 = vld [vmem:[#allocation7 + $0x8] sm:$0xff]   ;;  %vm119_vm0 = vcmask 261120   ;;  %vm653_vm1 = vmmov 0   ;;  %v90_v23 = vshrl.u32 %v89_v22, 7 }
  0x4d   :  { %124 = vmatpush1.bf16.msra.mxu0 %v505_v3  ;;  %452 = vmatpush3.bf16.msra.mxu1 %v509_v7  ;;  %v82_v9 = vpack.c.bf16 %v81_v6, %v81_v6  ;;  %v511_v10 = vld [vmem:[#allocation7 + $0x10] sm:$0xff]   ;;  %v512_v11 = vld [vmem:[#allocation7 + $0x18] sm:$0xff]   ;;  %v513_v12 = vld [vmem:[#allocation7 + $0x20] sm:$0xff]   ;;  %s654_s30 = smov [#allocation10]  }
  0x4e   :  { %125 = vmatprep.subr.bf16.mxu0 %v506_v4  ;;  %453 = vmatprep.subr.bf16.mxu1 %v652_v1  ;;  %v514_v13 = vld [vmem:[#allocation7 + $0x28] sm:$0xff]   ;;  %v515_v14 = vld [vmem:[#allocation7 + $0x30] sm:$0xff]   ;;  %v516_v15 = vld [vmem:[#allocation7 + $0x38] sm:$0xff]   ;;  %v91_v24 = vsub.s32 0, %v90_v23  ;;  %v95_v44 = vsub.s32 1, %v90_v23 }
  0x4f   :  { %467 = vmatprep.mubr.msk.bf16.mxu1 %vm653_vm1, %v652_v1  ;;  %v517_v16 = vld [vmem:[#allocation8] sm:$0xff]   ;;  %v518_v17 = vld [vmem:[#allocation8 + $0x8] sm:$0xff]   ;;  %v519_v18 = vld [vmem:[#allocation8 + $0x10] sm:$0xff]  }
  0x50   :  { %v520_v19 = vld [vmem:[#allocation8 + $0x18] sm:$0xff]   ;;  %v521_v20 = vld [vmem:[#allocation8 + $0x20] sm:$0xff]   ;;  %v522_v21 = vld [vmem:[#allocation8 + $0x28] sm:$0xff]  }
  0x51   :  { %126 = vmatpush1.bf16.msra.mxu0 %v508_v5  ;;  %454 = vmatpush3.bf16.msra.mxu1 %v510_v8  ;;  %v87_v25 = vld [vmem:[%s786_s2] sm:$0x3]  ;;  %v523_v34 = vld [vmem:[#allocation8 + $0x30] sm:$0xff]  }
  0x52   :  { %471 = vmatprep.subr.bf16.mxu0 %v652_v1  ;;  %455 = vmatprep.subr.bf16.mxu1 %v652_v1  ;;  %v92_v26 = vrot.slane %v87_v25, %v91_v24  ;;  %v524_v35 = vld [vmem:[#allocation8 + $0x38] sm:$0xff]   ;;  %v96_v46 = vrot.slane %v87_v25, %v95_v44 }
  0x53   :  { %v415_v36 = vld [vmem:[%s788_s4] ss:$0 sm:$0xff]  ;;  %s399_s4 = sshll.u32 %s654_s30, 4  ;;  %s400_s4 = int_to_ptr.vmem [resolvable:$true] %s399_s4 }
  0x54   :  { %414 = vmatmul.mubr.msk.bf16.vlgmr.msra.gmra.mrb[0].mxu0 %vm119_vm0, %v82_v9  ;;  %v424_v45 = vld [vmem:[%s790_s6] ss:$0 sm:$0xff]  ;;  %s613_s8 = scalar_lea.vmem %s400_s4, 128  ;;  %p618_p5 = scmp.lt.s32.totalorder %s400_s4, %s400_s4 }
  0x55   :  { %456 = vmatpush3.bf16.msra.mxu1 %v511_v10  ;;  %487 = vmatprep.mubr.msk.bf16.mxu0 %vm653_vm1, %v652_v1  ;;  %p614_p4 = scmp.ne.s32.totalorder %s400_s4, %s613_s8  ;;  %p619_p6 = scmp.lt.s32.totalorder %s613_s8, %s613_s8 }
  0x56   :  { %457 = vmatprep.subr.bf16.mxu1 %v652_v1  ;;  %472 = vmatpush3.bf16.msra.mxu0 %v517_v16 }
  0x57   :  { %473 = vmatprep.subr.bf16.mxu0 %v652_v1  ;;  %p620_p7 = por %p619_p6, %p618_p5 }
  0x59   :  { %458 = vmatpush3.bf16.msra.mxu1 %v512_v11  ;;  %p621_p8 = pnand %p620_p7, %p614_p4 }
  0x5a   :  { %459 = vmatprep.subr.bf16.mxu1 %v652_v1  ;;  %474 = vmatpush3.bf16.msra.mxu0 %v518_v17 }
  0x5b   :  { %475 = vmatprep.subr.bf16.mxu0 %v652_v1 }
  0x5d   :  { %460 = vmatpush3.bf16.msra.mxu1 %v513_v12 }
  0x5e   :  { %461 = vmatprep.subr.bf16.mxu1 %v652_v1  ;;  %476 = vmatpush3.bf16.msra.mxu0 %v519_v18 }
  0x5f   :  { %477 = vmatprep.subr.bf16.mxu0 %v652_v1 }
  0x61   :  { %462 = vmatpush3.bf16.msra.mxu1 %v514_v13 }
  0x62   :  { %463 = vmatprep.subr.bf16.mxu1 %v652_v1  ;;  %478 = vmatpush3.bf16.msra.mxu0 %v520_v19 }
  0x63   :  { %479 = vmatprep.subr.bf16.mxu0 %v652_v1 }
  0x65   :  { %464 = vmatpush3.bf16.msra.mxu1 %v515_v14 }
  0x66   :  { %465 = vmatprep.subr.bf16.mxu1 %v652_v1  ;;  %480 = vmatpush3.bf16.msra.mxu0 %v521_v20 }
  0x67   :  { %481 = vmatprep.subr.bf16.mxu0 %v652_v1 }
  0x69   :  { %466 = vmatpush3.bf16.msra.mxu1 %v516_v15 }
  0x6a   :  { %482 = vmatpush3.bf16.msra.mxu0 %v522_v21 }
  0x6b   :  { %483 = vmatprep.subr.bf16.mxu0 %v652_v1 }
  0x6e   :  { %484 = vmatpush3.bf16.msra.mxu0 %v523_v34 }
  0x6f   :  { %485 = vmatprep.subr.bf16.mxu0 %v652_v1 }
  0x72   :  { %486 = vmatpush3.bf16.msra.mxu0 %v524_v35 }
 0x127   :  { %v157_v27 = vpop.f32.mrb[0].mxu0 }
 0x128   :  { %v158_v28 = vadd.f32 %v157_v27, %v92_v26  ;;  %v159_v29 = vpop.f32.mrb[1].mxu0 }
 0x129   :  { %v161_v30 = vpop.f32.mrb[2].mxu0  ;;  %v160_v51 = vadd.f32 %v159_v29, %v96_v46 }
 0x12a   :  { %v164_v31 = vmax.f32 %v158_v28, 0.0  ;;  %v162_v32 = vpop.f32.mrb[3].mxu0 }
 0x12c   :  { %v165_v33 = vpack.c.bf16 %v164_v31, %v164_v31 }
 0x12e   :  { %468 = vmatmul.mubr.bf16.vlgmr.msra.gmra.mrb[0].mxu1 %v165_v33 }
 0x201   :  { %v271_v37 = vpop.f32.mrb[0].mxu1 }
 0x202   :  { %v272_v38 = vadd.f32 %v415_v36, %v271_v37  ;;  %v469_v39 = vpop.f32.mrb[1].mxu1 }
 0x203   :  { %v274_v40 = vpop.f32.mrb[2].mxu1 }
 0x204   :  { %v277_v41 = vmax.f32 %v272_v38, 0.0  ;;  %v470_v42 = vpop.f32.mrb[3].mxu1 }
 0x206   :  { %v278_v43 = vpack.c.bf16 %v277_v41, %v277_v41 }
 0x208   :  { %488 = vmatmul.mubr.bf16.vlgmr.msra.gmra.mrb[4].mxu0 %v278_v43 }
 0x2db   :  { %v384_v47 = vpop.f32.mrb[4].mxu0 }
 0x2dc   :  { %v385_v48 = vadd.f32 %v424_v45, %v384_v47  ;;  %v489_v49 = vpop.f32.mrb[5].mxu0 }
 0x2dd   :  { %v387_v50 = vpop.f32.mrb[6].mxu0 }
 0x2de   :  { %v390_v52 = vmax.f32 %v385_v48, 0.0  ;;  %v490_v53 = vpop.f32.mrb[7].mxu0 }
 0x2e0   :  { %v391_v54 = vadd.f32 %v390_v52, %v160_v51 }
 0x2e2   :  { %392 = vst.msk [vmem:[#allocation10] sm:$0xff] %vm119_vm0, %v391_v54 }
 0x2e3   :  { %624 = shalt.err (!%p621_p8)
}
 0x2e4   :  { %s625_s10 = scalar_lea.hbm %s791_s7, 128 }
 0x2e5   :  { %p626_p9 = scmp.ne.s32.totalorder %s791_s7, %s625_s10  ;;  %p629_p10 = scmp.lt.u32.totalorder %s625_s10, %s791_s7 }
 0x2e7   :  { %p631_p11 = pnand %p629_p10, %p626_p9 }
 0x2e9   :  { %634 = shalt.err (!%p631_p11)
}
 0x2ea   :  { %402 = dma.vmem_to_hbm [thread:$0]  %s400_s4, 128, %s791_s7, [#allocation4]  }
 0x2eb   :  { %641 = dma.done.wait [#allocation4], 128  }
 0x2ec   :  { %642 = vsyncadd [#allocation4], 4294967168 }
 0x2ed   :  { %406 = vsyncpa [#allocation3], 1 }
 0x2ee   :  { %407 = vsyncpa [#allocation6], 1 }
 0x2ef   :  { %408 = vsyncpa [#allocation9], 1 }
 0x2f0   :  { %409 = vsyncpa [#allocation4], 1 }

</bundles_post_ra>
